<compile_context>
chip_gen: v5e
topology: v5e:2x2
jax: 0.10.0
libtpu: 0.0.40
codegen_flags: <defaults>
</compile_context>

<pallas_src>
import functools

import numpy as np
import jax
import jax.numpy as jnp
from jax import lax
from jax.experimental import pallas as pl
from jax.experimental.pallas import tpu as pltpu


def _maxent_newton_kernel(c2_ref, mask_ref, var_ref, lam0_ref, out_ref,
                          *, tol, max_iter, use_bf16_exp):
    # c2_ref, mask_ref: (R, 128) f32 in VMEM. mask is 1.0 on real elements,
    #                   0.0 on padding (where C2 is also 0).
    # var_ref, lam0_ref: (1,) f32 scalars in SMEM.
    # out_ref: (1,) f32 scalar in SMEM (the converged lam).
    C2 = c2_ref[...]                 # loop-invariant, stays resident
    mask = mask_ref[...]             # loop-invariant 0/1 validity mask

    e = jnp.float32(np.e)
    var_e = var_ref[0] * e           # == var / exp(-1), hoisted

    def stats(lam):
        # Weighted moments of C^2 under w = exp(-lam * C^2), padding masked.
        # NOTE: like the reference, no overflow guard on the exponent.
        arg = -lam * C2
        if use_bf16_exp:
            # Perf knob for v6e/v7x only (bf16 EUP ~2x exp throughput).
            w = jnp.exp(arg.astype(jnp.bfloat16)).astype(jnp.float32) * mask
        else:
            w = jnp.exp(arg) * mask                      # EUP + free VALU mul
        wC2 = w * C2                                     # VALU (slack)
        wC4 = wC2 * C2                                   # C^4 never materialized
        s0 = jnp.sum(w)              # sum(exp(-lam*C^2))        (XLU, free)
        s2 = jnp.sum(wC2)            # sum(C^2 * exp(-lam*C^2))
        s4 = jnp.sum(wC4)            # sum(C^4 * exp(-lam*C^2))
        inv_denom = e / s0           # 1 / sum(exp(-1 - lam*C^2)); one divide
        fx = var_e - s2 * inv_denom
        dxfx = (s0 + s4) * inv_denom
        return fx, dxfx

    def cond(state):
        i, _lam, fx, _dxfx = state
        # Mirrors: `while abs(fx) > tol: ...; i += 1; if i > max_iter: break`
        return jnp.logical_and(jnp.abs(fx) > jnp.float32(tol),
                               i <= jnp.int32(max_iter))

    def body(state):
        i, lam, fx, dxfx = state
        lam_new = lam - fx / dxfx
        fx_new, dxfx_new = stats(lam_new)    # single stats eval per step
        return i + 1, lam_new, fx_new, dxfx_new

    lam0 = lam0_ref[0]
    fx0, dxfx0 = stats(lam0)
    _, lam_final, _, _ = lax.while_loop(
        cond, body, (jnp.int32(0), lam0, fx0, dxfx0))
    out_ref[0] = lam_final


def _vmem_limit_bytes(x_bytes):
    """Scoped-VMEM limit from the actual working set, clamped to device capacity."""
    # Resident: C2 + mask; per-iteration temporaries: w, wC2, wC4 (+ slack).
    needed = 6 * x_bytes + (4 << 20)
    capacity = None
    try:
        info = pltpu.get_tpu_info()
        capacity = getattr(info, "vmem_capacity_bytes", None)
    except Exception:
        capacity = None
    if capacity is None:
        capacity = 64 << 20          # conservative fallback (v7x physical VMEM)
    # Never below 16 MiB (v5e default scoped limit), leave 8 MiB headroom.
    return int(min(max(needed, 16 << 20), capacity - (8 << 20)))


def maxent_newton(x, var, lam=0.0, max_iter=100, tol=1e-15, use_bf16_exp=False):
    """Pallas wrapper: returns the converged Lagrange multiplier lam."""
    x = jnp.asarray(x, jnp.float32).reshape(-1)
    n = x.shape[0]
    # Pad to a multiple of 8*128 so the data forms dense (8,128) f32 tiles.
    npad = max(1024, ((n + 1023) // 1024) * 1024)
    rows = npad // 128

    # Square in the wrapper: the kernel only ever needs C^2.
    c2 = jnp.zeros((npad,), jnp.float32).at[:n].set(x * x).reshape(rows, 128)
    mask = jnp.zeros((npad,), jnp.float32).at[:n].set(1.0).reshape(rows, 128)

    var_s = jnp.asarray(var, jnp.float32).reshape(1)
    lam_s = jnp.asarray(lam, jnp.float32).reshape(1)

    kernel = functools.partial(_maxent_newton_kernel,
                               tol=float(tol),
                               max_iter=int(max_iter),
                               use_bf16_exp=bool(use_bf16_exp))

    x_bytes = npad * 4
    compiler_params = pltpu.CompilerParams(
        vmem_limit_bytes=_vmem_limit_bytes(x_bytes))

    out = pl.pallas_call(
        kernel,
        out_shape=jax.ShapeDtypeStruct((1,), jnp.float32),
        in_specs=[
            pl.BlockSpec(memory_space=pltpu.MemorySpace.VMEM),   # C2   (R, 128)
            pl.BlockSpec(memory_space=pltpu.MemorySpace.VMEM),   # mask (R, 128)
            pl.BlockSpec(memory_space=pltpu.MemorySpace.SMEM),   # var  (1,)
            pl.BlockSpec(memory_space=pltpu.MemorySpace.SMEM),   # lam0 (1,)
        ],
        out_specs=pl.BlockSpec(memory_space=pltpu.MemorySpace.SMEM),  # lam (1,)
        compiler_params=compiler_params,
    )(c2, mask, var_s, lam_s)
    return out[0]


def _numpy_reference(x, var, lam=0.0, max_iter=100, tol=1e-15):
    """Direct float64 transcription of the PyTorch/numpy module (for checking)."""
    C = np.asarray(x, np.float64)

    def fx_var(lam2):
        return var / np.exp(-1) - np.dot(C ** 2, np.exp(-lam2 * C ** 2)) \
            / np.exp(-1 - lam2 * C ** 2).sum()

    def dxfx_var(lam2):
        s = np.exp(-1 - lam2 * C ** 2).sum()
        return np.sum(C ** 4 * np.exp(-lam2 * C ** 2) / s) \
            + np.sum(np.exp(-lam2 * C ** 2) / s)

    i = 0
    old_lam = lam
    while abs(fx_var(lam)) > tol:
        lam = old_lam - fx_var(lam) / dxfx_var(lam)
        old_lam = lam
        i += 1
        if i > max_iter:
            break
    return lam


if __name__ == "__main__":
    key = jax.random.PRNGKey(0)
    # "x" is the 1-D support / sample vector the module's numpy math implies.
    x = jax.random.normal(key, (100,), dtype=jnp.float32)
    var = jnp.float32(0.5)

    # NOTE: tol=1e-15 is unreachable in f32, so the loop runs the full
    # max_iter+1 updates (same as the reference semantics, just worst-case).
    lam_kernel = maxent_newton(x, var, lam=0.0, max_iter=100, tol=1e-15)
    jax.block_until_ready(lam_kernel)

    lam_ref = _numpy_reference(np.asarray(x), float(var))
    np.testing.assert_allclose(float(lam_kernel), lam_ref, rtol=1e-3, atol=1e-4)

    print("KERNEL_OK")
</pallas_src>

<mosaic_0001>
module attributes {stable_mosaic.version = 11 : i64} {
  func.func @_maxent_newton_kernel(%arg0: memref<8x128xf32, #tpu.memory_space<vmem>>, %arg1: memref<8x128xf32, #tpu.memory_space<vmem>>, %arg2: memref<1xf32, #tpu.memory_space<smem>>, %arg3: memref<1xf32, #tpu.memory_space<smem>>, %arg4: memref<1xf32, #tpu.memory_space<smem>>) attributes {dimension_semantics = [], scalar_prefetch = 0 : i64, scratch_operands = 0 : i64, tpu.core_type = #tpu.core_type<tc>} {
    %c0 = arith.constant 0 : index
    %c0_0 = arith.constant 0 : index
    %0 = vector.load %arg0[%c0, %c0_0] : memref<8x128xf32, #tpu.memory_space<vmem>>, vector<8x128xf32>
    %c0_1 = arith.constant 0 : index
    %c0_2 = arith.constant 0 : index
    %1 = vector.load %arg1[%c0_1, %c0_2] : memref<8x128xf32, #tpu.memory_space<vmem>>, vector<8x128xf32>
    %c0_3 = arith.constant 0 : index
    %2 = memref.load %arg2[%c0_3] : memref<1xf32, #tpu.memory_space<smem>>
    %cst = arith.constant 2.71828175 : f32
    %3 = arith.mulf %2, %cst : f32
    %c0_4 = arith.constant 0 : index
    %4 = memref.load %arg3[%c0_4] : memref<1xf32, #tpu.memory_space<smem>>
    %cst_5 = arith.constant 0.000000e+00 : f32
    %5 = arith.subf %cst_5, %4 : f32
    %6 = vector.broadcast %5 : f32 to vector<8x128xf32>
    %7 = arith.mulf %6, %0 : vector<8x128xf32>
    %8 = math.exp %7 : vector<8x128xf32>
    %9 = arith.mulf %8, %1 : vector<8x128xf32>
    %10 = arith.mulf %9, %0 : vector<8x128xf32>
    %11 = arith.mulf %10, %0 : vector<8x128xf32>
    %12 = vector.shape_cast %9 : vector<8x128xf32> to vector<1x8x128xf32>
    %cst_6 = arith.constant dense<0.000000e+00> : vector<1xf32>
    %13 = vector.multi_reduction <add>, %12, %cst_6 [1, 2] : vector<1x8x128xf32> to vector<1xf32>
    %14 = vector.shape_cast %13 : vector<1xf32> to vector<1x1x1xf32>
    %15 = vector.extract %14[0, 0, 0] : f32 from vector<1x1x1xf32>
    %16 = vector.shape_cast %10 : vector<8x128xf32> to vector<1x8x128xf32>
    %cst_7 = arith.constant dense<0.000000e+00> : vector<1xf32>
    %17 = vector.multi_reduction <add>, %16, %cst_7 [1, 2] : vector<1x8x128xf32> to vector<1xf32>
    %18 = vector.shape_cast %17 : vector<1xf32> to vector<1x1x1xf32>
    %19 = vector.extract %18[0, 0, 0] : f32 from vector<1x1x1xf32>
    %20 = vector.shape_cast %11 : vector<8x128xf32> to vector<1x8x128xf32>
    %cst_8 = arith.constant dense<0.000000e+00> : vector<1xf32>
    %21 = vector.multi_reduction <add>, %20, %cst_8 [1, 2] : vector<1x8x128xf32> to vector<1xf32>
    %22 = vector.shape_cast %21 : vector<1xf32> to vector<1x1x1xf32>
    %23 = vector.extract %22[0, 0, 0] : f32 from vector<1x1x1xf32>
    %cst_9 = arith.constant 2.71828175 : f32
    %24 = arith.divf %cst_9, %15 : f32
    %25 = arith.mulf %19, %24 : f32
    %26 = arith.subf %3, %25 : f32
    %27 = arith.addf %15, %23 : f32
    %28 = arith.mulf %27, %24 : f32
    %cst_10 = arith.constant 2.71828175 : f32
    %c0_i32 = arith.constant 0 : i32
    %29:4 = scf.while (%arg5 = %c0_i32, %arg6 = %4, %arg7 = %26, %arg8 = %28) : (i32, f32, f32, f32) -> (i32, f32, f32, f32) {
      %31 = math.absf %arg7 : f32
      %cst_12 = arith.constant 1.000000e-15 : f32
      %32 = arith.cmpf ogt, %31, %cst_12 : f32
      %c100_i32 = arith.constant 100 : i32
      %33 = arith.cmpi sle, %arg5, %c100_i32 : i32
      %34 = arith.andi %32, %33 : i1
      scf.condition(%34) %arg5, %arg6, %arg7, %arg8 : i32, f32, f32, f32
    } do {
    ^bb0(%arg5: i32, %arg6: f32, %arg7: f32, %arg8: f32):
      %31 = arith.divf %arg7, %arg8 : f32
      %32 = arith.subf %arg6, %31 : f32
      %cst_12 = arith.constant 0.000000e+00 : f32
      %33 = arith.subf %cst_12, %32 : f32
      %34 = vector.broadcast %33 : f32 to vector<8x128xf32>
      %35 = arith.mulf %34, %0 : vector<8x128xf32>
      %36 = math.exp %35 : vector<8x128xf32>
      %37 = arith.mulf %36, %1 : vector<8x128xf32>
      %38 = arith.mulf %37, %0 : vector<8x128xf32>
      %39 = arith.mulf %38, %0 : vector<8x128xf32>
      %40 = vector.shape_cast %37 : vector<8x128xf32> to vector<1x8x128xf32>
      %cst_13 = arith.constant dense<0.000000e+00> : vector<1xf32>
      %41 = vector.multi_reduction <add>, %40, %cst_13 [1, 2] : vector<1x8x128xf32> to vector<1xf32>
      %42 = vector.shape_cast %41 : vector<1xf32> to vector<1x1x1xf32>
      %43 = vector.extract %42[0, 0, 0] : f32 from vector<1x1x1xf32>
      %44 = vector.shape_cast %38 : vector<8x128xf32> to vector<1x8x128xf32>
      %cst_14 = arith.constant dense<0.000000e+00> : vector<1xf32>
      %45 = vector.multi_reduction <add>, %44, %cst_14 [1, 2] : vector<1x8x128xf32> to vector<1xf32>
      %46 = vector.shape_cast %45 : vector<1xf32> to vector<1x1x1xf32>
      %47 = vector.extract %46[0, 0, 0] : f32 from vector<1x1x1xf32>
      %48 = vector.shape_cast %39 : vector<8x128xf32> to vector<1x8x128xf32>
      %cst_15 = arith.constant dense<0.000000e+00> : vector<1xf32>
      %49 = vector.multi_reduction <add>, %48, %cst_15 [1, 2] : vector<1x8x128xf32> to vector<1xf32>
      %50 = vector.shape_cast %49 : vector<1xf32> to vector<1x1x1xf32>
      %51 = vector.extract %50[0, 0, 0] : f32 from vector<1x1x1xf32>
      %52 = arith.divf %cst_10, %43 : f32
      %53 = arith.mulf %47, %52 : f32
      %54 = arith.subf %3, %53 : f32
      %55 = arith.addf %43, %51 : f32
      %56 = arith.mulf %55, %52 : f32
      %c1_i32 = arith.constant 1 : i32
      %57 = arith.addi %arg5, %c1_i32 : i32
      scf.yield %57, %32, %54, %56 : i32, f32, f32, f32
    }
    %c0_11 = arith.constant 0 : index
    %30 = memref.load %arg4[%c0_11] : memref<1xf32, #tpu.memory_space<smem>>
    memref.store %29#1, %arg4[%c0_11] : memref<1xf32, #tpu.memory_space<smem>>
    return
  }
}

</mosaic_0001>

<bundles_post_ra>
// kernel: tpu_custom_call.1
= control target key start
LH: loop header
LB: loop body
LE: loop exit
PB: predicated region body
PF: predicated region fallthrough
CT: control target
= control target key end

     0   :  { %11 = vsyncpa [#allocation5], 0  ;;  %s516_s0 = inlined_call_operand.hbm [shape: f32[8,128], index: 0, kind: input, shape index: {}]   ;;  %s517_s1 = inlined_call_operand.hbm [shape: f32[8,128], index: 1, kind: input, shape index: {}]   ;;  %s518_s2 = inlined_call_operand.<no memory space> [shape: f32[1], index: 2, kind: input, shape index: {}]   ;;  %s519_s3 = inlined_call_operand.<no memory space> [shape: f32[1], index: 3, kind: input, shape index: {}]   ;;  %s520_s4 = inlined_call_operand.hbm [shape: f32[1], index: 4, kind: output, shape index: {}]  }
   0x1   :  { %12 = vsyncpa [#allocation8], 0 }
   0x2   :  { %13 = vsyncpa [#allocation6], 0  ;;  %s19_s17 = sshll.u32 %s516_s0, 4  ;;  %s410_s18 = smov [#allocation4]   ;;  %s20_s17 = int_to_ptr.hbm [resolvable:$true] %s19_s17 }
   0x3   :  { %s21_s19 = sshll.u32 %s410_s18, 4  ;;  %s30_s22 = sshll.u32 %s517_s1, 4  ;;  %s22_s19 = int_to_ptr.vmem [resolvable:$true] %s21_s19  ;;  %s31_s22 = int_to_ptr.hbm [resolvable:$true] %s30_s22 }
   0x4   :  { %24 = dma.hbm_to_vmem [thread:$0]  %s20_s17, 128, %s22_s19, [#allocation5]  }
   0x5   :  { %s411_s23 = smov [#allocation7]  }
   0x6   :  { %s32_s24 = sshll.u32 %s411_s23, 4  ;;  %s33_s24 = int_to_ptr.vmem [resolvable:$true] %s32_s24 }
   0x7   :  { %35 = dma.hbm_to_vmem [thread:$0]  %s31_s22, 128, %s33_s24, [#allocation8]  }
   0x8   :  { %384 = dma.done.wait [#allocation5], 128  }
   0x9   :  { %385 = vsyncadd [#allocation5], 4294967168 }
   0xa   :  { %386 = dma.done.wait [#allocation8], 128  }
   0xb   :  { %387 = vsyncadd [#allocation8], 4294967168  ;;  %s53_s26 = ssub.f32 0.0, %s519_s3  ;;  %v447_v1 = vld [vmem:[#allocation4] sm:$0xff]  ;;  %v450_v4 = vld [vmem:[#allocation7] sm:$0xff]  ;;  %s521_s17 = smov %s519_s3 }
   0xc   :  { %s51_s5 = smul.f32 2.7182817, %s518_s2 }
   0xd   :  { %v54_v0 = vstv %s53_s26 }
   0xe   :  { %v55_v2 = vmul.f32 %v54_v0, %v447_v1 }
  0x10   :  { %v56_v3 = vmul.f32 1.442695, %v55_v2 }
  0x12   :  { %294 = vpow2.f32 %v56_v3 }
  0x18   :  { %v295_v5 = vpop.eup %294 }
  0x19   :  { %v58_v6 = vmul.f32 %v295_v5, %v450_v4 }
  0x1b   :  { %61 = vadd.xlane.f32.xlu0 %v58_v6  ;;  %v59_v7 = vmul.f32 %v58_v6, %v447_v1 }
  0x1d   :  { %v60_v8 = vmul.f32 %v59_v7, %v447_v1 }
  0x1f   :  { %79 = vadd.xlane.f32.xlu1 %v60_v8 }
  0x23   :  { %70 = vadd.xlane.f32.xlu0 %v59_v7 }
  0x8e   :  { %v62_v9 = vpop.xlane.xlu0 %61 }
  0x8f   :  { %v63_v10 = vrot.slane %v62_v9, 4 }
  0x91   :  { %v64_v11 = vadd.f32 %v63_v10, %v62_v9 }
  0x92   :  { %v80_v12 = vpop.xlane.xlu1 %79 }
  0x93   :  { %v65_v13 = vrot.slane %v64_v11, 2  ;;  %v81_v14 = vrot.slane %v80_v12, 4 }
  0x95   :  { %v82_v15 = vadd.f32 %v81_v14, %v80_v12  ;;  %v66_v16 = vadd.f32 %v65_v13, %v64_v11 }
  0x96   :  { %v71_v17 = vpop.xlane.xlu0 %70 }
  0x97   :  { %v72_v18 = vrot.slane %v71_v17, 4  ;;  %v83_v19 = vrot.slane %v82_v15, 2  ;;  %v67_v20 = vrot.slane %v66_v16, 1 }
  0x99   :  { %v73_v21 = vadd.f32 %v72_v18, %v71_v17  ;;  %v84_v22 = vadd.f32 %v83_v19, %v82_v15  ;;  %v68_v23 = vadd.f32 %v67_v20, %v66_v16 }
  0x9b   :  { %v74_v24 = vrot.slane %v73_v21, 2  ;;  %233 = vpush %v68_v23  ;;  %v85_v25 = vrot.slane %v84_v22, 1 }
  0x9d   :  { %v75_v26 = vadd.f32 %v74_v24, %v73_v21  ;;  %v86_v28 = vadd.f32 %v85_v25, %v84_v22 }
  0x9f   :  { %v76_v27 = vrot.slane %v75_v26, 1 }
  0xa1   :  { %v77_v29 = vadd.f32 %v76_v27, %v75_v26 }
  0xa3   :  { %235 = vpush %v77_v29 }
  0xa4   :  { %237 = vpush %v86_v28 }
  0xcc   :  { %s234_s1 = spop %233 }
  0xcd   :  { %v88_v30 = vstv %s234_s1 }
  0xce   :  { %296 = vrcp.f32 %v88_v30  ;;  %v100_v34 = vand.u32 2147483648, %v88_v30  ;;  %v98_v36 = vand.u32 2147483647, %v88_v30  ;;  %vm94_vm1 = vweird.f32 %v88_v30 }
  0xd0   :  { %v101_v38 = vor.u32 1.1754944e-38, %v100_v34  ;;  %vm99_vm3 = vcmp.eq.f32.partialorder %v98_v36, 8.507059e+37 }
  0xd4   :  { %v297_v31 = vpop.eup %296  ;;  %s236_s27 = spop %235 }
  0xd5   :  { %v90_v32 = vmul.f32 %v297_v31, %v88_v30  ;;  %vm95_vm0 = vweird.f32 %v297_v31  ;;  %s238_s28 = spop %237 }
  0xd6   :  { %vm96_vm2 = vmor %vm94_vm1, %vm95_vm0  ;;  %s107_s8 = sadd.f32 %s238_s28, %s234_s1 }
  0xd7   :  { %v91_v33 = vsub.f32 1.0, %v90_v32 }
  0xd9   :  { %v92_v35 = vmul.f32 %v297_v31, %v91_v33 }
  0xdb   :  { %v93_v37 = vadd.f32 %v297_v31, %v92_v35 }
  0xdd   :  { %v97_v39 = vsel %vm96_vm2, %v297_v31, %v93_v37 }
  0xde   :  { %v102_v40 = vsel %vm99_vm3, %v101_v38, %v97_v39 }
  0xdf   :  { %239 = vpush %v102_v40 }
 0x110   :  { %s240_s6 = spop %239 }
 0x111   :  { %s104_s7 = smul.f32 2.7182817, %s240_s6 }
 0x113   :  { %s105_s9 = smul.f32 %s236_s27, %s104_s7 }
 0x114   :  { %s108_s10 = smul.f32 %s107_s8, %s104_s7  }
 0x115   :  { %s106_s13 = ssub.f32 %s51_s5, %s105_s9  }
 0x117   :  { %s219_s14 = sand.u32 2147483647, %s106_s13 }
 0x118   :  { %p220_p0 = scmp.gt.f32.partialorder %s219_s14, 1e-15 }
 0x119   :  { %s476_s20 = smov (%p220_p0), 0  }
 0x11a   :  { %223 = sbr.rel (!%p220_p0) target bundleno = 638 (0x27e), region = 46 }
 0x11f LB: > { %v121_v41 = vstv %s392_s10  ;;  %s195_s25 = sadd.s32 1, %s404_s20   ;;  %s404_s20 = sphi %s476_s20, %s524_s20   ;;  %s400_s3 = sphi %s519_s3, %s523_s3   ;;  %s396_s13 = sphi %s106_s13, %s192_s13   ;;  %s392_s10 = sphi %s108_s10, %s194_s10  }
 0x120   : > { %298 = vrcp.f32 %v121_v41  ;;  %v133_v44 = vand.u32 2147483648, %v121_v41  ;;  %vm127_vm4 = vweird.f32 %v121_v41  ;;  %v131_v46 = vand.u32 2147483647, %v121_v41  ;;  %p116_p1 = scmp.le.s32.totalorder %s195_s25, 100  ;;  %s524_s20 = smov %s195_s25 }
 0x122   : > { %v134_v48 = vor.u32 1.1754944e-38, %v133_v44  ;;  %vm132_vm7 = vcmp.eq.f32.partialorder %v131_v46, 8.507059e+37 }
 0x126   : > { %v299_v42 = vpop.eup %298 }
 0x127   : > { %v123_v43 = vmul.f32 %v299_v42, %v121_v41  ;;  %vm128_vm5 = vweird.f32 %v299_v42 }
 0x128   : > { %vm129_vm6 = vmor %vm127_vm4, %vm128_vm5 }
 0x129   : > { %v124_v45 = vsub.f32 1.0, %v123_v43 }
 0x12b   : > { %v125_v47 = vmul.f32 %v299_v42, %v124_v45 }
 0x12d   : > { %v126_v49 = vadd.f32 %v299_v42, %v125_v47 }
 0x12f   : > { %v130_v50 = vsel %vm129_vm6, %v299_v42, %v126_v49 }
 0x130   : > { %v135_v51 = vsel %vm132_vm7, %v134_v48, %v130_v50 }
 0x131   : > { %241 = vpush %v135_v51 }
 0x162   : > { %s242_s21 = spop %241 }
 0x163   : > { %s137_s22 = smul.f32 %s396_s13, %s242_s21 }
 0x165   : > { %s484_s3 = ssub.f32 %s400_s3, %s137_s22  }
 0x167   : > { %s522_s23 = smov %s484_s3 }
 0x168   : > { %s139_s24 = ssub.f32 0.0, %s522_s23 }
 0x16a   : > { %v140_v52 = vstv %s139_s24 }
 0x16b   : > { %v141_v53 = vmul.f32 %v140_v52, %v447_v1 }
 0x16d   : > { %v142_v54 = vmul.f32 1.442695, %v141_v53 }
 0x16f   : > { %300 = vpow2.f32 %v142_v54 }
 0x175   : > { %v301_v55 = vpop.eup %300 }
 0x176   : > { %v144_v56 = vmul.f32 %v301_v55, %v450_v4 }
 0x178   : > { %147 = vadd.xlane.f32.xlu0 %v144_v56  ;;  %v145_v57 = vmul.f32 %v144_v56, %v447_v1 }
 0x17a   : > { %v146_v58 = vmul.f32 %v145_v57, %v447_v1 }
 0x17c   : > { %165 = vadd.xlane.f32.xlu1 %v146_v58 }
 0x180   : > { %156 = vadd.xlane.f32.xlu0 %v145_v57 }
 0x1eb   : > { %v148_v59 = vpop.xlane.xlu0 %147 }
 0x1ec   : > { %v149_v60 = vrot.slane %v148_v59, 4 }
 0x1ee   : > { %v150_v61 = vadd.f32 %v149_v60, %v148_v59 }
 0x1ef   : > { %v166_v62 = vpop.xlane.xlu1 %165 }
 0x1f0   : > { %v151_v63 = vrot.slane %v150_v61, 2  ;;  %v167_v0 = vrot.slane %v166_v62, 4 }
 0x1f2   : > { %v168_v2 = vadd.f32 %v167_v0, %v166_v62  ;;  %v152_v3 = vadd.f32 %v151_v63, %v150_v61 }
 0x1f3   : > { %v157_v5 = vpop.xlane.xlu0 %156 }
 0x1f4   : > { %v169_v6 = vrot.slane %v168_v2, 2  ;;  %v158_v7 = vrot.slane %v157_v5, 4  ;;  %v153_v8 = vrot.slane %v152_v3, 1 }
 0x1f6   : > { %v159_v9 = vadd.f32 %v158_v7, %v157_v5  ;;  %v154_v10 = vadd.f32 %v153_v8, %v152_v3  ;;  %v170_v11 = vadd.f32 %v169_v6, %v168_v2 }
 0x1f8   : > { %v160_v12 = vrot.slane %v159_v9, 2  ;;  %243 = vpush %v154_v10  ;;  %v171_v14 = vrot.slane %v170_v11, 1 }
 0x1fa   : > { %v161_v13 = vadd.f32 %v160_v12, %v159_v9  ;;  %v172_v17 = vadd.f32 %v171_v14, %v170_v11 }
 0x1fc   : > { %v162_v15 = vrot.slane %v161_v13, 1 }
 0x1fe   : > { %v163_v16 = vadd.f32 %v162_v15, %v161_v13 }
 0x200   : > { %245 = vpush %v163_v16 }
 0x201   : > { %247 = vpush %v172_v17 }
 0x229   : > { %s244_s3 = spop %243 }
 0x22a   : > { %v174_v18 = vstv %s244_s3 }
 0x22b   : > { %302 = vrcp.f32 %v174_v18  ;;  %v186_v22 = vand.u32 2147483648, %v174_v18  ;;  %v184_v24 = vand.u32 2147483647, %v174_v18  ;;  %vm180_vm9 = vweird.f32 %v174_v18 }
 0x22d   : > { %v187_v26 = vor.u32 1.1754944e-38, %v186_v22  ;;  %vm185_vm11 = vcmp.eq.f32.partialorder %v184_v24, 8.507059e+37 }
 0x231   : > { %v303_v19 = vpop.eup %302  ;;  %s246_s0 = spop %245 }
 0x232   : > { %v176_v20 = vmul.f32 %v303_v19, %v174_v18  ;;  %vm181_vm8 = vweird.f32 %v303_v19  ;;  %s248_s26 = spop %247 }
 0x233   : > { %vm182_vm10 = vmor %vm180_vm9, %vm181_vm8  ;;  %s193_s28 = sadd.f32 %s248_s26, %s244_s3  ;;  %s523_s3 = smov %s522_s23 }
 0x234   : > { %v177_v21 = vsub.f32 1.0, %v176_v20 }
 0x236   : > { %v178_v23 = vmul.f32 %v303_v19, %v177_v21 }
 0x238   : > { %v179_v25 = vadd.f32 %v303_v19, %v178_v23 }
 0x23a   : > { %v183_v27 = vsel %vm182_vm10, %v303_v19, %v179_v25 }
 0x23b   : > { %v188_v28 = vsel %vm185_vm11, %v187_v26, %v183_v27 }
 0x23c   : > { %249 = vpush %v188_v28 }
 0x26d   : > { %s250_s1 = spop %249 }
 0x26e   : > { %s190_s27 = smul.f32 2.7182817, %s250_s1 }
 0x270   : > { %s191_s29 = smul.f32 %s246_s0, %s190_s27 }
 0x271   : > { %s194_s10 = smul.f32 %s193_s28, %s190_s27  }
 0x272   : > { %s192_s13 = ssub.f32 %s51_s5, %s191_s29  }
 0x274   : > { %s114_s7 = sand.u32 2147483647, %s192_s13 }
 0x275   : > { %p115_p2 = scmp.gt.f32.partialorder %s114_s7, 1e-15 }
 0x277   : > { %p117_p3 = pnand %p116_p1, %p115_p2 }
 0x278   :  { %s525_s17 = smov (%p117_p3), %s522_s23 }
 0x279   :  { %120 = sbr.rel (!%p117_p3) target bundleno = 287 (0x11f), region = 52 }
 0x27e PF:  { %197 = sst [smem:[#allocation9]] %s408_s17  ;;  %s203_s11 = sshll.u32 %s520_s4, 4  ;;  %s408_s17 = sphi %s521_s17, %s525_s17   ;;  %s204_s11 = int_to_ptr.hbm [resolvable:$true] %s203_s11 }
 0x27f   :  { %s412_s12 = smov [#allocation9]  }
 0x280   :  { %206 = dma.smem_to_hbm %s412_s12, 16, %s204_s11, [#allocation6]  }
 0x281   :  { %388 = dma.done.wait [#allocation6], 16  }
 0x282   :  { %389 = vsyncadd [#allocation6], 4294967280 }
 0x283   :  { %211 = sfence }
 0x284   :  { %212 = vsyncpa [#allocation5], 1 }
 0x285   :  { %213 = vsyncpa [#allocation8], 1 }
 0x286   :  { %214 = vsyncpa [#allocation6], 1 }

</bundles_post_ra>
